<compile_context>
chip_gen: v5e
topology: v5e:2x2
jax: 0.10.0
libtpu: 0.0.40
codegen_flags: <defaults>
</compile_context>

<pallas_src>
import jax
import jax.numpy as jnp
from jax.experimental import pallas as pl
from jax.experimental.pallas import tpu as pltpu


def _round_up(n: int, m: int) -> int:
    return ((n + m - 1) // m) * m


def mlp_kernel(x_ref, w1_ref, b1_ref, w2_ref, b2_ref, o_ref):
    # x_ref:  (TM, D)    bf16     w1_ref: (D, Hd_p)   bf16    b1_ref: (1, Hd_p) f32
    # w2_ref: (Hd_p, C_p) bf16    b2_ref: (1, C_p)    f32     o_ref:  (TM, C_p) f32
    x = x_ref[...]
    # First matmul on the MXU, f32 accumulation; bias + ReLU epilogue in f32 (VPU).
    h = jnp.dot(x, w1_ref[...], preferred_element_type=jnp.float32) + b1_ref[...]
    h = jnp.maximum(h, 0.0)
    # Second (tiny) matmul, bf16 operands, f32 accumulation.
    out = jnp.dot(h.astype(jnp.bfloat16), w2_ref[...],
                  preferred_element_type=jnp.float32) + b2_ref[...]
    o_ref[...] = out.astype(o_ref.dtype)


def mlp_classifier_forward(x_nchw, w1, b1, w2, b2):
    """x_nchw: (b, 3, H, W) float32 -> logits (b, num_classes) float32."""
    B = x_nchw.shape[0]
    D = x_nchw.shape[1] * x_nchw.shape[2] * x_nchw.shape[3]
    Hd = w1.shape[1]
    C = w2.shape[1]

    # Lane-friendly padded sizes.
    Hd_p = _round_up(Hd, 128)          # hidden padded to a lane multiple
    C_p = _round_up(C, 128)            # lane-dense output block
    TM = min(256, _round_up(B, 8))     # batch tile (sublane multiple; 256 when B is big)
    B_p = _round_up(B, TM)

    # torch.nn.Flatten: row-major flatten of (b, 3, H, W) -> (b, 3*H*W).
    x2d = x_nchw.reshape(B, D)

    # Padding + bf16 casts (wrapper glue). Padded hidden units have zero weights
    # and zero bias -> ReLU(0)=0 -> zero contribution through zero w2 rows, so
    # logits are bit-for-bit unaffected by the padding.
    x_p = jnp.zeros((B_p, D), jnp.bfloat16).at[:B].set(x2d.astype(jnp.bfloat16))
    w1_p = jnp.zeros((D, Hd_p), jnp.bfloat16).at[:, :Hd].set(w1.astype(jnp.bfloat16))
    b1_p = jnp.zeros((1, Hd_p), jnp.float32).at[:, :Hd].set(b1.reshape(1, Hd))
    w2_p = jnp.zeros((Hd_p, C_p), jnp.bfloat16).at[:Hd, :C].set(w2.astype(jnp.bfloat16))
    b2_p = jnp.zeros((1, C_p), jnp.float32).at[:, :C].set(b2.reshape(1, C))

    grid = (B_p // TM,)

    out_p = pl.pallas_call(
        mlp_kernel,
        out_shape=jax.ShapeDtypeStruct((B_p, C_p), jnp.float32),
        grid=grid,
        in_specs=[
            pl.BlockSpec((TM, D), lambda i: (i, 0)),       # batch tile of activations
            pl.BlockSpec((D, Hd_p), lambda i: (0, 0)),     # weights resident across grid
            pl.BlockSpec((1, Hd_p), lambda i: (0, 0)),
            pl.BlockSpec((Hd_p, C_p), lambda i: (0, 0)),
            pl.BlockSpec((1, C_p), lambda i: (0, 0)),
        ],
        out_specs=pl.BlockSpec((TM, C_p), lambda i: (i, 0)),
        compiler_params=pltpu.CompilerParams(
            dimension_semantics=("parallel",),             # batch axis shards across TCs on v7x
        ),
    )(x_p, w1_p, b1_p, w2_p, b2_p)

    # Strip batch / class padding.
    return out_p[:B, :C]


def init_params(key, in_dim, hidden_dim, num_classes):
    """Deterministic init mirroring torch.nn.Linear (U[-1/sqrt(fan_in), 1/sqrt(fan_in)])."""
    k1, k2, k3, k4 = jax.random.split(key, 4)
    bound1 = 1.0 / (in_dim ** 0.5)
    bound2 = 1.0 / (hidden_dim ** 0.5)
    # Stored transposed relative to torch ((in_dim, out_dim)) so the kernel does x @ W.
    w1 = jax.random.uniform(k1, (in_dim, hidden_dim), jnp.float32, -bound1, bound1)
    b1 = jax.random.uniform(k2, (hidden_dim,), jnp.float32, -bound1, bound1)
    w2 = jax.random.uniform(k3, (hidden_dim, num_classes), jnp.float32, -bound2, bound2)
    b2 = jax.random.uniform(k4, (num_classes,), jnp.float32, -bound2, bound2)
    return w1, b1, w2, b2


if __name__ == "__main__":
    # Small shapes consistent with the module: batch=2, channels=3, spatial=16x16.
    B, Cin, H, W = 2, 3, 16, 16
    hidden_dim, num_classes = 96, 6
    in_dim = Cin * H * W  # 768

    key = jax.random.PRNGKey(0)
    kx, kp = jax.random.split(key)
    x = jax.random.normal(kx, (B, Cin, H, W), dtype=jnp.float32)
    w1, b1, w2, b2 = init_params(kp, in_dim, hidden_dim, num_classes)

    logits = mlp_classifier_forward(x, w1, b1, w2, b2)
    jax.block_until_ready(logits)
    assert logits.shape == (B, num_classes)

    # Reference at the same (bf16-operand / f32-accumulate) precision as the kernel.
    x2d = x.reshape(B, in_dim)
    h_ref = jnp.maximum(
        jnp.dot(x2d.astype(jnp.bfloat16), w1.astype(jnp.bfloat16),
                preferred_element_type=jnp.float32) + b1, 0.0)
    ref_bf16 = jnp.dot(h_ref.astype(jnp.bfloat16), w2.astype(jnp.bfloat16),
                       preferred_element_type=jnp.float32) + b2
    assert jnp.allclose(logits, ref_bf16, atol=1e-3, rtol=1e-3)

    # Loose check against the pure-f32 math to confirm semantics are preserved.
    ref_f32 = jnp.maximum(x2d @ w1 + b1, 0.0) @ w2 + b2
    assert jnp.allclose(logits, ref_f32, atol=5e-2, rtol=5e-2)

    print("KERNEL_OK")
</pallas_src>

<mosaic_0001>
module attributes {stable_mosaic.version = 11 : i64} {
  func.func @mlp_kernel(%arg0: i32, %arg1: memref<8x768xbf16, #tpu.memory_space<vmem>>, %arg2: memref<768x128xbf16, #tpu.memory_space<vmem>>, %arg3: memref<1x128xf32, #tpu.memory_space<vmem>>, %arg4: memref<128x128xbf16, #tpu.memory_space<vmem>>, %arg5: memref<1x128xf32, #tpu.memory_space<vmem>>, %arg6: memref<8x128xf32, #tpu.memory_space<vmem>>) attributes {dimension_semantics = [#tpu.dimension_semantics<parallel>], iteration_bounds = array<i64: 1>, scalar_prefetch = 0 : i64, scratch_operands = 0 : i64, tpu.core_type = #tpu.core_type<tc>, window_params = [{transform_indices = @transform_0, window_bounds = array<i64: 8, 768>}, {pipeline_mode = #tpu.pipeline_mode<synchronous>, transform_indices = @transform_1, window_bounds = array<i64: 768, 128>}, {pipeline_mode = #tpu.pipeline_mode<synchronous>, transform_indices = @transform_2, window_bounds = array<i64: 1, 128>}, {pipeline_mode = #tpu.pipeline_mode<synchronous>, transform_indices = @transform_3, window_bounds = array<i64: 128, 128>}, {pipeline_mode = #tpu.pipeline_mode<synchronous>, transform_indices = @transform_4, window_bounds = array<i64: 1, 128>}, {transform_indices = @transform_5, window_bounds = array<i64: 8, 128>}]} {
    %c0 = arith.constant 0 : index
    %c0_0 = arith.constant 0 : index
    %0 = vector.load %arg1[%c0, %c0_0] : memref<8x768xbf16, #tpu.memory_space<vmem>>, vector<8x768xbf16>
    %c0_1 = arith.constant 0 : index
    %c0_2 = arith.constant 0 : index
    %1 = vector.load %arg2[%c0_1, %c0_2] : memref<768x128xbf16, #tpu.memory_space<vmem>>, vector<768x128xbf16>
    %cst = arith.constant dense<0.000000e+00> : vector<8x128xf32>
    %2 = tpu.matmul %0, %1, %cst {dimension_numbers = #tpu.dot_dimension_numbers<[1], [0], [0], [1], [0, 0, 1, 1], [], []>} : vector<8x768xbf16>, vector<768x128xbf16>, vector<8x128xf32> -> vector<8x128xf32>
    %c0_3 = arith.constant 0 : index
    %c0_4 = arith.constant 0 : index
    %3 = vector.load %arg3[%c0_3, %c0_4] : memref<1x128xf32, #tpu.memory_space<vmem>>, vector<1x128xf32>
    %4 = vector.broadcast %3 : vector<1x128xf32> to vector<8x128xf32>
    %5 = arith.addf %2, %4 : vector<8x128xf32>
    %cst_5 = arith.constant 0.000000e+00 : f32
    %6 = vector.broadcast %cst_5 : f32 to vector<8x128xf32>
    %7 = arith.maximumf %5, %6 : vector<8x128xf32>
    %8 = arith.truncf %7 : vector<8x128xf32> to vector<8x128xbf16>
    %c0_6 = arith.constant 0 : index
    %c0_7 = arith.constant 0 : index
    %9 = vector.load %arg4[%c0_6, %c0_7] : memref<128x128xbf16, #tpu.memory_space<vmem>>, vector<128x128xbf16>
    %cst_8 = arith.constant dense<0.000000e+00> : vector<8x128xf32>
    %10 = tpu.matmul %8, %9, %cst_8 {dimension_numbers = #tpu.dot_dimension_numbers<[1], [0], [0], [1], [0, 0, 1, 1], [], []>} : vector<8x128xbf16>, vector<128x128xbf16>, vector<8x128xf32> -> vector<8x128xf32>
    %c0_9 = arith.constant 0 : index
    %c0_10 = arith.constant 0 : index
    %11 = vector.load %arg5[%c0_9, %c0_10] : memref<1x128xf32, #tpu.memory_space<vmem>>, vector<1x128xf32>
    %12 = vector.broadcast %11 : vector<1x128xf32> to vector<8x128xf32>
    %13 = arith.addf %10, %12 : vector<8x128xf32>
    %c0_11 = arith.constant 0 : index
    %c0_12 = arith.constant 0 : index
    %14 = vector.load %arg6[%c0_11, %c0_12] : memref<8x128xf32, #tpu.memory_space<vmem>>, vector<8x128xf32>
    tpu.vector_store %arg6[%c0_11, %c0_12], %13 {strides = array<i32>} : memref<8x128xf32, #tpu.memory_space<vmem>>, vector<8x128xf32>,
    return
  }
  func.func @transform_0(%arg0: i32) -> (i32, i32) {
    %c0_i32 = arith.constant 0 : i32
    %c0_i32_0 = arith.constant 0 : i32
    return %arg0, %c0_i32 : i32, i32
  }
  func.func @transform_1(%arg0: i32) -> (i32, i32) {
    %c0_i32 = arith.constant 0 : i32
    %c0_i32_0 = arith.constant 0 : i32
    %c0_i32_1 = arith.constant 0 : i32
    return %c0_i32, %c0_i32_0 : i32, i32
  }
  func.func @transform_2(%arg0: i32) -> (i32, i32) {
    %c0_i32 = arith.constant 0 : i32
    %c0_i32_0 = arith.constant 0 : i32
    %c0_i32_1 = arith.constant 0 : i32
    return %c0_i32, %c0_i32_0 : i32, i32
  }
  func.func @transform_3(%arg0: i32) -> (i32, i32) {
    %c0_i32 = arith.constant 0 : i32
    %c0_i32_0 = arith.constant 0 : i32
    %c0_i32_1 = arith.constant 0 : i32
    return %c0_i32, %c0_i32_0 : i32, i32
  }
  func.func @transform_4(%arg0: i32) -> (i32, i32) {
    %c0_i32 = arith.constant 0 : i32
    %c0_i32_0 = arith.constant 0 : i32
    %c0_i32_1 = arith.constant 0 : i32
    return %c0_i32, %c0_i32_0 : i32, i32
  }
  func.func @transform_5(%arg0: i32) -> (i32, i32) {
    %c0_i32 = arith.constant 0 : i32
    %c0_i32_0 = arith.constant 0 : i32
    return %arg0, %c0_i32 : i32, i32
  }
}

</mosaic_0001>

<bundles_post_ra>
// kernel: tpu_custom_call.1
= control target key start
LH: loop header
LB: loop body
LE: loop exit
PB: predicated region body
PF: predicated region fallthrough
CT: control target
= control target key end

     0   :  { %10 = vsyncpa [#allocation3], 0  ;;  %s1102_s0 = inlined_call_operand.hbm [shape: bf16[8,768], index: 0, kind: input, shape index: {}]   ;;  %s1103_s1 = inlined_call_operand.hbm [shape: bf16[768,128], index: 1, kind: input, shape index: {}]   ;;  %s1104_s2 = inlined_call_operand.vmem [shape: f32[1,128], index: 2, kind: input, shape index: {}]   ;;  %s1105_s3 = inlined_call_operand.hbm [shape: bf16[128,128], index: 3, kind: input, shape index: {}]   ;;  %s1106_s4 = inlined_call_operand.vmem [shape: f32[1,128], index: 4, kind: input, shape index: {}]   ;;  %s1107_s5 = inlined_call_operand.hbm [shape: f32[8,128], index: 5, kind: output, shape index: {}]  }
   0x1   :  { %11 = vsyncpa [#allocation6], 0  ;;  %s28_s20 = sshll.u32 %s1103_s1, 4  ;;  %s29_s20 = int_to_ptr.hbm [resolvable:$true] %s28_s20 }
   0x2   :  { %12 = vsyncpa [#allocation4], 0  ;;  %s1048_s21 = smov [#allocation5]   ;;  %s18_s25 = sshll.u32 %s1102_s0, 4  ;;  %s19_s25 = int_to_ptr.hbm [resolvable:$true] %s18_s25 }
   0x3   :  { %s30_s22 = sshll.u32 %s1048_s21, 4  ;;  %s1049_s26 = smov 64   ;;  %s31_s22 = int_to_ptr.vmem [resolvable:$true] %s30_s22 }
   0x4   :  { %s1050_s27 = smov 4   ;;  %s1051_s28 = smov [#allocation2]  }
   0x5   :  { %36 = dma.hbm_to_vmem [thread:$0]  %s29_s20, 6144, %s31_s22, [#allocation6], %s1049_s26, %s1049_s26, %s1050_s27  }
   0x6   :  { %s20_s29 = sshll.u32 %s1051_s28, 4  ;;  %s43_s7 = sshll.u32 %s1105_s3, 4  ;;  %s21_s29 = int_to_ptr.vmem [resolvable:$true] %s20_s29  ;;  %s44_s7 = int_to_ptr.hbm [resolvable:$true] %s43_s7 }
   0x7   :  { %23 = dma.hbm_to_vmem [thread:$0]  %s19_s25, 384, %s21_s29, [#allocation3]  }
   0x8   :  { %s1052_s1 = smov [#allocation7]  }
   0x9   :  { %s45_s8 = sshll.u32 %s1052_s1, 4  ;;  %s46_s8 = int_to_ptr.vmem [resolvable:$true] %s45_s8 }
   0xa   :  { %51 = dma.hbm_to_vmem [thread:$0]  %s44_s7, 1024, %s46_s8, [#allocation6], %s1049_s26, %s1049_s26, %s1050_s27  }
   0xb   :  { %1042 = dma.done.wait [#allocation3], 384  }
   0xc   :  { %1043 = vsyncadd [#allocation3], 4294966912 }
   0xd   :  { %1044 = dma.done.wait [#allocation6], 7168  }
   0xe   :  { %1045 = vsyncadd [#allocation6], 4294960128  ;;  %v889_v0 = vld [vmem:[#allocation5 + $0x38] sm:$0xff]  ;;  %v888_v2 = vld [vmem:[#allocation5 + $0x30] sm:$0xff]  ;;  %s647_s14 = sshll.u32 %s1107_s5, 4  ;;  %s648_s14 = int_to_ptr.hbm [resolvable:$true] %s647_s14 }
   0xf   :  { %v897_v1 = vld [vmem:[#allocation5 + $0x78] sm:$0xff]  ;;  %478 = vmatpush.bf16.msra.mxu0 %v889_v0  ;;  %v896_v3 = vld [vmem:[#allocation5 + $0x70] sm:$0xff]  ;;  %v887_v8 = vld [vmem:[#allocation5 + $0x28] sm:$0xff] }
  0x10   :  { %491 = vmatpush.bf16.msra.mxu1 %v897_v1  ;;  %v905_v4 = vld [vmem:[#allocation5 + $0xb8] sm:$0xff]  ;;  %v904_v6 = vld [vmem:[#allocation5 + $0xb0] sm:$0xff]  ;;  %v895_v9 = vld [vmem:[#allocation5 + $0x68] sm:$0xff] }
  0x11   :  { %v913_v5 = vld [vmem:[#allocation5 + $0xf8] sm:$0xff]  ;;  %504 = vmatpush.bf16.msra.mxu2 %v905_v4  ;;  %v912_v7 = vld [vmem:[#allocation5 + $0xf0] sm:$0xff]  ;;  %v903_v10 = vld [vmem:[#allocation5 + $0xa8] sm:$0xff] }
  0x12   :  { %517 = vmatpush.bf16.msra.mxu3 %v913_v5  ;;  %v911_v11 = vld [vmem:[#allocation5 + $0xe8] sm:$0xff]  ;;  %v886_v12 = vld [vmem:[#allocation5 + $0x20] sm:$0xff]  ;;  %v885_v16 = vld [vmem:[#allocation5 + $0x18] sm:$0xff] }
  0x13   :  { %479 = vmatpush.bf16.msra.mxu0 %v888_v2  ;;  %v894_v13 = vld [vmem:[#allocation5 + $0x60] sm:$0xff]  ;;  %v893_v17 = vld [vmem:[#allocation5 + $0x58] sm:$0xff]  ;;  %v884_v20 = vld [vmem:[#allocation5 + $0x10] sm:$0xff] }
  0x14   :  { %492 = vmatpush.bf16.msra.mxu1 %v896_v3  ;;  %v902_v14 = vld [vmem:[#allocation5 + $0xa0] sm:$0xff]  ;;  %v901_v18 = vld [vmem:[#allocation5 + $0x98] sm:$0xff]  ;;  %v892_v21 = vld [vmem:[#allocation5 + $0x50] sm:$0xff] }
  0x15   :  { %505 = vmatpush.bf16.msra.mxu2 %v904_v6  ;;  %v910_v15 = vld [vmem:[#allocation5 + $0xe0] sm:$0xff]  ;;  %v909_v19 = vld [vmem:[#allocation5 + $0xd8] sm:$0xff]  ;;  %v900_v22 = vld [vmem:[#allocation5 + $0x90] sm:$0xff] }
  0x16   :  { %518 = vmatpush.bf16.msra.mxu3 %v912_v7  ;;  %v908_v23 = vld [vmem:[#allocation5 + $0xd0] sm:$0xff]  ;;  %v883_v24 = vld [vmem:[#allocation5 + $0x8] sm:$0xff]  ;;  %v882_v32 = vld [vmem:[#allocation5] sm:$0xff] }
  0x17   :  { %480 = vmatpush.bf16.msra.mxu0 %v887_v8  ;;  %v891_v25 = vld [vmem:[#allocation5 + $0x48] sm:$0xff]  ;;  %v67_v31 = vld [vmem:[#allocation2 + $0x8] sm:$0xff]  ;;  %v890_v33 = vld [vmem:[#allocation5 + $0x40] sm:$0xff] }
  0x18   :  { %493 = vmatpush.bf16.msra.mxu1 %v895_v9  ;;  %v66_v26 = vld [vmem:[#allocation2] sm:$0xff]  ;;  %v921_v34 = vld [vmem:[#allocation5 + $0x138] sm:$0xff]  ;;  %v898_v36 = vld [vmem:[#allocation5 + $0x80] sm:$0xff]  ;;  %v174_v37 = vunpack.c.l.b16 %v67_v31  ;;  %v175_v40 = vunpack.c.h.b16 %v67_v31 }
  0x19   :  { %506 = vmatpush.bf16.msra.mxu2 %v903_v10  ;;  %v899_v27 = vld [vmem:[#allocation5 + $0x88] sm:$0xff]  ;;  %v172_v28 = vunpack.c.l.b16 %v66_v26  ;;  %v173_v30 = vunpack.c.h.b16 %v66_v26  ;;  %v929_v35 = vld [vmem:[#allocation5 + $0x178] sm:$0xff]  ;;  %v906_v41 = vld [vmem:[#allocation5 + $0xc0] sm:$0xff] }
  0x1a   :  { %519 = vmatpush.bf16.msra.mxu3 %v911_v11  ;;  %v907_v29 = vld [vmem:[#allocation5 + $0xc8] sm:$0xff]  ;;  %v920_v42 = vld [vmem:[#allocation5 + $0x130] sm:$0xff]  ;;  %v180_v44 = vpack.c.b16 %v174_v37, %v174_v37  ;;  %v181_v45 = vpack.c.b16 %v175_v40, %v175_v40  ;;  %v918_v48 = vld [vmem:[#allocation5 + $0x120] sm:$0xff] }
  0x1b   :  { %481 = vmatpush.bf16.msra.mxu0 %v886_v12  ;;  %v178_v38 = vpack.c.b16 %v172_v28, %v172_v28  ;;  %v179_v39 = vpack.c.b16 %v173_v30, %v173_v30  ;;  %v928_v43 = vld [vmem:[#allocation5 + $0x170] sm:$0xff]  ;;  %v919_v46 = vld [vmem:[#allocation5 + $0x128] sm:$0xff]  ;;  %v926_v49 = vld [vmem:[#allocation5 + $0x160] sm:$0xff] }
  0x1c   :  { %494 = vmatpush.bf16.msra.mxu1 %v894_v13  ;;  %v927_v47 = vld [vmem:[#allocation5 + $0x168] sm:$0xff]  ;;  %v917_v50 = vld [vmem:[#allocation5 + $0x118] sm:$0xff]  ;;  %v916_v52 = vld [vmem:[#allocation5 + $0x110] sm:$0xff] }
  0x1d   :  { %507 = vmatpush.bf16.msra.mxu2 %v902_v14  ;;  %v925_v51 = vld [vmem:[#allocation5 + $0x158] sm:$0xff]  ;;  %v924_v53 = vld [vmem:[#allocation5 + $0x150] sm:$0xff]  ;;  %v915_v54 = vld [vmem:[#allocation5 + $0x108] sm:$0xff] }
  0x1e   :  { %520 = vmatpush.bf16.msra.mxu3 %v910_v15  ;;  %v923_v55 = vld [vmem:[#allocation5 + $0x148] sm:$0xff]  ;;  %v68_v56 = vld [vmem:[#allocation2 + $0x10] sm:$0xff]  ;;  %v914_v59 = vld [vmem:[#allocation5 + $0x100] sm:$0xff] }
  0x1f   :  { %482 = vmatpush.bf16.msra.mxu0 %v885_v16  ;;  %v176_v57 = vunpack.c.l.b16 %v68_v56  ;;  %v177_v58 = vunpack.c.h.b16 %v68_v56  ;;  %v922_v60 = vld [vmem:[#allocation5 + $0x140] sm:$0xff]  ;;  %v937_v63 = vld [vmem:[#allocation7 + $0x38] sm:$0xff]  ;;  %v936_v0 = vld [vmem:[#allocation7 + $0x30] sm:$0xff] }
  0x20   :  { %495 = vmatpush.bf16.msra.mxu1 %v893_v17  ;;  %v935_v1 = vld [vmem:[#allocation7 + $0x28] sm:$0xff]  ;;  %v934_v2 = vld [vmem:[#allocation7 + $0x20] sm:$0xff]  ;;  %v933_v3 = vld [vmem:[#allocation7 + $0x18] sm:$0xff] }
  0x21   :  { %508 = vmatpush.bf16.msra.mxu2 %v901_v18  ;;  %v182_v61 = vpack.c.b16 %v176_v57, %v176_v57  ;;  %v183_v62 = vpack.c.b16 %v177_v58, %v177_v58  ;;  %v932_v4 = vld [vmem:[#allocation7 + $0x10] sm:$0xff]  ;;  %v931_v5 = vld [vmem:[#allocation7 + $0x8] sm:$0xff]  ;;  %v930_v8 = vld [vmem:[#allocation7] sm:$0xff] }
  0x22   :  { %521 = vmatpush.bf16.msra.mxu3 %v909_v19  ;;  %v944_v13 = vld [vmem:[%s1104_s2] ss:$0 sm:$0xff]  ;;  %s1053_s2 = smov [#allocation8]  }
  0x23   :  { %483 = vmatpush.bf16.msra.mxu0 %v884_v20  ;;  %v945_v28 = vld [vmem:[%s1106_s4] ss:$0 sm:$0xff]  ;;  %s645_s11 = sshll.u32 %s1053_s2, 4  ;;  %s646_s11 = int_to_ptr.vmem [resolvable:$true] %s645_s11 }
  0x24   :  { %496 = vmatpush.bf16.msra.mxu1 %v892_v21 }
  0x25   :  { %509 = vmatpush.bf16.msra.mxu2 %v900_v22 }
  0x26   :  { %522 = vmatpush.bf16.msra.mxu3 %v908_v23 }
  0x27   :  { %484 = vmatpush.bf16.msra.mxu0 %v883_v24 }
  0x28   :  { %497 = vmatpush.bf16.msra.mxu1 %v891_v25 }
  0x29   :  { %510 = vmatpush.bf16.msra.mxu2 %v899_v27 }
  0x2a   :  { %523 = vmatpush.bf16.msra.mxu3 %v907_v29 }
  0x2b   :  { %485 = vmatpush.bf16.msra.mxu0 %v882_v32 }
  0x2c   :  { %498 = vmatpush.bf16.msra.mxu1 %v890_v33 }
  0x2d   :  { %511 = vmatpush.bf16.msra.mxu2 %v898_v36 }
  0x2e   :  { %486 = vmatmul.bf16.vlgmr.msra.gmra.mxu0 %v178_v38  ;;  %524 = vmatpush.bf16.msra.mxu3 %v906_v41 }
  0x2f   :  { %530 = vmatpush.bf16.msrb.mxu0 %v921_v34  ;;  %499 = vmatmul.bf16.vlgmr.msra.gmra.mxu1 %v179_v39 }
  0x30   :  { %543 = vmatpush.bf16.msrb.mxu1 %v929_v35  ;;  %512 = vmatmul.bf16.vlgmr.msra.gmra.mxu2 %v180_v44 }
  0x31   :  { %525 = vmatmul.bf16.vlgmr.msra.gmra.mxu3 %v181_v45  ;;  %626 = vmatpush.bf16.msrb.mxu2 %v937_v63 }
  0x33   :  { %531 = vmatpush.bf16.msrb.mxu0 %v920_v42 }
  0x34   :  { %544 = vmatpush.bf16.msrb.mxu1 %v928_v43 }
  0x35   :  { %627 = vmatpush.bf16.msrb.mxu2 %v936_v0 }
  0x37   :  { %532 = vmatpush.bf16.msrb.mxu0 %v919_v46 }
  0x38   :  { %545 = vmatpush.bf16.msrb.mxu1 %v927_v47 }
  0x39   :  { %628 = vmatpush.bf16.msrb.mxu2 %v935_v1 }
  0x3b   :  { %533 = vmatpush.bf16.msrb.mxu0 %v918_v48 }
  0x3c   :  { %546 = vmatpush.bf16.msrb.mxu1 %v926_v49 }
  0x3d   :  { %629 = vmatpush.bf16.msrb.mxu2 %v934_v2 }
  0x3f   :  { %534 = vmatpush.bf16.msrb.mxu0 %v917_v50 }
  0x40   :  { %547 = vmatpush.bf16.msrb.mxu1 %v925_v51 }
  0x41   :  { %630 = vmatpush.bf16.msrb.mxu2 %v933_v3 }
  0x43   :  { %535 = vmatpush.bf16.msrb.mxu0 %v916_v52 }
  0x44   :  { %548 = vmatpush.bf16.msrb.mxu1 %v924_v53 }
  0x45   :  { %631 = vmatpush.bf16.msrb.mxu2 %v932_v4 }
  0x47   :  { %536 = vmatpush.bf16.msrb.mxu0 %v915_v54 }
  0x48   :  { %549 = vmatpush.bf16.msrb.mxu1 %v923_v55 }
  0x49   :  { %632 = vmatpush.bf16.msrb.mxu2 %v931_v5 }
  0x4b   :  { %537 = vmatpush.bf16.msrb.mxu0 %v914_v59 }
  0x4c   :  { %550 = vmatpush.bf16.msrb.mxu1 %v922_v60 }
  0x4d   :  { %633 = vmatpush.bf16.msrb.mxu2 %v930_v8 }
  0x4e   :  { %538 = vmatmul.bf16.vlgmr.msrb.gmra.mxu0 %v182_v61 }
  0x4f   :  { %551 = vmatmul.bf16.vlgmr.msrb.gmra.mxu1 %v183_v62 }
  0xab   :  { %v487_v6 = vpop.f32.mrf.mxu0 }
  0xac   :  { %v500_v7 = vpop.f32.mrf.mxu1  ;;  %v488_v14 = vadd.f32 %v944_v13, %v487_v6 }
  0xae   :  { %v501_v17 = vadd.f32 %v500_v7, %v488_v14 }
  0xb3   :  { %v489_v9 = vpop.f32.mrf.mxu0  ;;  %v513_v11 = vpop.f32.mrf.mxu2 }
  0xb4   :  { %v502_v10 = vpop.f32.mrf.mxu1  ;;  %v526_v12 = vpop.f32.mrf.mxu3  ;;  %v514_v18 = vadd.f32 %v513_v11, %v501_v17 }
  0xb6   :  { %v527_v19 = vadd.f32 %v526_v12, %v514_v18 }
  0xbb   :  { %v515_v15 = vpop.f32.mrf.mxu2 }
  0xbc   :  { %v528_v16 = vpop.f32.mrf.mxu3 }
  0xcb   :  { %v539_v20 = vpop.f32.mrf.mxu0 }
  0xcc   :  { %v552_v21 = vpop.f32.mrf.mxu1  ;;  %v540_v22 = vadd.f32 %v539_v20, %v527_v19 }
  0xce   :  { %v553_v23 = vadd.f32 %v552_v21, %v540_v22 }
  0xd0   :  { %v556_v24 = vmax.f32 %v553_v23, 0.0 }
  0xd2   :  { %v557_v25 = vpack.c.bf16 %v556_v24, %v556_v24 }
  0xd3   :  { %v541_v26 = vpop.f32.mrf.mxu0 }
  0xd4   :  { %v554_v27 = vpop.f32.mrf.mxu1  ;;  %634 = vmatmul.bf16.vlgmr.msrb.gmra.mxu2 %v557_v25 }
 0x157   :  { %v635_v29 = vpop.f32.mrf.mxu2 }
 0x158   :  { %v636_v30 = vadd.f32 %v945_v28, %v635_v29 }
 0x15a   :  { %639 = vst [vmem:[#allocation8] sm:$0xff] %v636_v30 }
 0x15b   :  { %650 = dma.vmem_to_hbm [thread:$0]  %s646_s11, 128, %s648_s14, [#allocation4]  }
 0x15f   :  { %v637_v31 = vpop.f32.mrf.mxu2 }
 0x160   :  { %1046 = dma.done.wait [#allocation4], 128  }
 0x161   :  { %1047 = vsyncadd [#allocation4], 4294967168 }
 0x162   :  { %655 = vsyncpa [#allocation3], 1 }
 0x163   :  { %656 = vsyncpa [#allocation6], 1 }
 0x164   :  { %657 = vsyncpa [#allocation4], 1 }

</bundles_post_ra>
